<compile_context>
chip_gen: v6e
topology: v6e:2x2x1
jax: 0.10.0
libtpu: 0.0.40
codegen_flags: <defaults>
</compile_context>

<pallas_src>
import functools

import jax
import jax.numpy as jnp
from jax import lax
from jax.experimental import pallas as pl
from jax.experimental.pallas import tpu as pltpu


def _round_up(x, m):
    return ((x + m - 1) // m) * m


# -----------------------------------------------------------------------------
# Fused kernel: 3x3/stride-2 conv (single MXU matmul over stacked taps) +
# 2x2 max-pool + masked per-tile BN partial statistics.
# Channel-major: channels on sublanes, flat wide-grid pixels on lanes.
# -----------------------------------------------------------------------------
def _conv_pool_stats_kernel(pmain_ref, phalo_ref, mask_ref, w_ref,
                            y_ref, st_ref, xstk_ref,
                            *, conv_taps, pool_idx, tp):
    cin_e = pmain_ref.shape[2]          # (even-padded) input channels
    cconv = w_ref.shape[0]
    n_pool = y_ref.shape[1] - cconv     # true input-channel count

    # One contiguous (4, Cin_e, TP + HALO) window (aligned lane concat).
    xall = jnp.concatenate([pmain_ref[0], phalo_ref[0]], axis=-1)

    # Stack the 9 unit-offset tap views into the (9*Cin_e, TP) matmul operand
    # held in VMEM scratch; track the running 2x2 max-pool on the way (the
    # pool taps are a subset of the conv taps, so each view is built once).
    pool = None
    for j, (phase, off) in enumerate(conv_taps):
        v = xall[phase, :, off:off + tp]                  # (Cin_e, TP) bf16
        xstk_ref[j * cin_e:(j + 1) * cin_e, :] = v
        if j in pool_idx:
            pool = v if pool is None else jnp.maximum(pool, v)

    # Convolution: ONE (Cconv, 9*Cin_e) @ (9*Cin_e, TP) bf16 MXU matmul with
    # f32 accumulation.  (Bias is omitted: it cancels under training-mode BN.)
    conv = jnp.dot(w_ref[...], xstk_ref[...],
                   preferred_element_type=jnp.float32)    # (Cconv, TP)

    conv_st = conv.astype(y_ref.dtype)
    pool_st = pool[:n_pool].astype(y_ref.dtype)

    # Single lane-dense output tile holding [conv ; pool] along channels.
    y_ref[0, :cconv, :] = conv_st
    y_ref[0, cconv:, :] = pool_st

    # Masked per-tile BN partial statistics over the same rounded values that
    # get normalized later; junk-column / tail lanes are masked out.
    m = mask_ref[...]                                     # (1, TP) 0/1 f32
    convf = conv_st.astype(jnp.float32)
    poolf = pool_st.astype(jnp.float32)
    cm = convf * m
    pm = poolf * m
    st_ref[0, 0, :cconv, :] = jnp.concatenate(
        [jnp.sum(cm, axis=-1, keepdims=True),
         jnp.sum(cm * convf, axis=-1, keepdims=True)], axis=1)   # (Cconv, 2)
    st_ref[0, 0, cconv:, :] = jnp.concatenate(
        [jnp.sum(pm, axis=-1, keepdims=True),
         jnp.sum(pm * poolf, axis=-1, keepdims=True)], axis=1)   # (Cin, 2)


# -----------------------------------------------------------------------------
# Wrapper: bf16 parity-split preprocessing, one pallas_call, O(Cout) BN glue,
# and a single fused XLA pass for affine + ReLU + junk-column drop.
# -----------------------------------------------------------------------------
@functools.partial(jax.jit, static_argnames=("eps", "tp_target"))
def downsampler_block(x_nchw, w_conv, b_conv, gamma, beta, eps=1e-3,
                      tp_target=8192):
    # b_conv is accepted for interface fidelity but has no effect on the
    # forward output: training-mode BN subtracts the batch mean, which absorbs
    # the per-channel bias exactly.  (It would only affect running stats.)
    del b_conv

    N, Cin, H, W = x_nchw.shape
    Cconv = w_conv.shape[0]
    Cout = Cconv + Cin
    assert H % 2 == 0 and W % 2 == 0, "even spatial dims expected (ERFNet)"
    Ho, Wo = H // 2, W // 2
    Wp2 = Wo + 1                       # wide-grid row width (1 junk col/row)
    Hp = Ho + 1                        # parity-phase height
    Lwide = Ho * Wp2                   # flat wide-grid output pixels

    # Pad input channels to an even count so every bf16 sublane store in the
    # kernel covers whole 32-bit packed words (zero weights on pad channels).
    Cin_e = Cin + (Cin % 2)

    HALO = _round_up(Wp2 + 2, 128)     # covers the largest tap offset (Wp2+1)

    # --- spatial tile: as fat as tp_target allows, capped so the per-step
    #     VMEM footprint (double-buffered blocks + scratch + temporaries)
    #     stays under ~28 MiB (headroom on v7x's 64 MiB VMEM / 32 MiB scope).
    per_lane = (2 * 4 * Cin_e * 2      # pmain block, double-buffered, bf16
                + 4 * Cin_e * 2        # xall window temp, bf16
                + 9 * Cin_e * 2        # stacked-operand VMEM scratch, bf16
                + Cin_e * 2            # live tap / pool temporaries, bf16
                + 2 * Cout * 4         # f32 conv + stats temporaries
                + 2 * Cout * 2         # y output block, double-buffered, bf16
                + 2 * 4)               # mask block, double-buffered, f32
    vmem_budget = 28 * 1024 * 1024
    chunks = min(pl.cdiv(Lwide, HALO),
                 max(1, tp_target // HALO),
                 max(1, vmem_budget // (per_lane * HALO)))
    chunks = max(1, chunks)
    TP = HALO * chunks
    n_tiles = pl.cdiv(Lwide, TP)
    Lw = n_tiles * TP
    Lpad = Lw + HALO

    # Odd Cconv would split a packed bf16 sublane word between the conv and
    # pool stores; fall back to f32 intermediates in that (rare) case.
    y_dtype = jnp.bfloat16 if (Cconv % 2 == 0) else jnp.float32

    # --- preprocessing: ONE bf16 pad + stride-2 parity-split pass (~0.5x the
    #     f32 input bytes).  Phases: 0=ee, 1=eo, 2=oe, 3=oo of the padded grid.
    xb = jnp.pad(x_nchw.astype(jnp.bfloat16),
                 ((0, 0), (0, Cin_e - Cin), (1, 1), (1, 1)))
    parity = jnp.stack(
        [xb[:, :, 0::2, 0::2], xb[:, :, 0::2, 1::2],
         xb[:, :, 1::2, 0::2], xb[:, :, 1::2, 1::2]],
        axis=1).reshape(N, 4, Cin_e, Hp * Wp2)
    parity = jnp.pad(parity, ((0, 0), (0, 0), (0, 0), (0, Lpad - Hp * Wp2)))

    # Validity mask over the wide grid (drops junk column + tail padding).
    g = jnp.arange(Lw, dtype=jnp.int32)
    mask = (((g % Wp2) < Wo) & (g < Lwide)).astype(jnp.float32).reshape(1, Lw)

    # Conv weights -> (Cconv, 9*Cin_e) bf16; column (kh*3+kw)*Cin_e + c matches
    # the stacked-operand row layout built inside the kernel.
    w_p = jnp.pad(w_conv, ((0, 0), (0, Cin_e - Cin), (0, 0), (0, 0)))
    w_stk = jnp.transpose(w_p, (0, 2, 3, 1)).reshape(Cconv, 9 * Cin_e)
    w_stk = w_stk.astype(jnp.bfloat16)

    # (kh, kw) -> (parity phase, flat offset), j = kh*3 + kw.
    conv_taps = ((0, 0), (1, 0), (0, 1),
                 (2, 0), (3, 0), (2, 1),
                 (0, Wp2), (1, Wp2), (0, Wp2 + 1))
    pool_idx = (4, 5, 7, 8)            # taps forming the 2x2 max-pool window

    kernel = functools.partial(_conv_pool_stats_kernel,
                               conv_taps=conv_taps, pool_idx=pool_idx, tp=TP)

    y_lw, st = pl.pallas_call(
        kernel,
        out_shape=(jax.ShapeDtypeStruct((N, Cout, Lw), y_dtype),
                   jax.ShapeDtypeStruct((N, n_tiles, Cout, 2), jnp.float32)),
        grid_spec=pltpu.PrefetchScalarGridSpec(
            num_scalar_prefetch=0,
            grid=(N, n_tiles),
            in_specs=[
                pl.BlockSpec((1, 4, Cin_e, TP), lambda n, t: (n, 0, 0, t)),
                pl.BlockSpec((1, 4, Cin_e, HALO),
                             lambda n, t: (n, 0, 0, (t + 1) * (TP // HALO))),
                pl.BlockSpec((1, TP), lambda n, t: (0, t)),
                pl.BlockSpec((Cconv, 9 * Cin_e), lambda n, t: (0, 0)),
            ],
            out_specs=(
                pl.BlockSpec((1, Cout, TP), lambda n, t: (n, 0, t)),
                pl.BlockSpec((1, 1, Cout, 2), lambda n, t: (n, t, 0, 0)),
            ),
            scratch_shapes=[pltpu.VMEM((9 * Cin_e, TP), jnp.bfloat16)]),
        compiler_params=pltpu.CompilerParams(
            dimension_semantics=("parallel", "parallel"),
            vmem_limit_bytes=40 * 1024 * 1024),
    )(parity, parity, mask, w_stk)

    # --- glue: batch statistics -> folded per-channel scale/shift (O(Cout)).
    cnt = jnp.float32(N * Ho * Wo)
    s = jnp.sum(st, axis=(0, 1))                    # (Cout, 2): [sum, ssq]
    mean = s[:, 0] / cnt
    var = s[:, 1] / cnt - mean * mean               # biased (PyTorch BN, train)
    scale = gamma.astype(jnp.float32) / jnp.sqrt(var + eps)
    shift = beta.astype(jnp.float32) - mean * scale

    # --- one fused XLA pass: junk-column drop + BN affine + ReLU -> NCHW f32.
    y = y_lw[:, :, :Lwide].reshape(N, Cout, Ho, Wp2)[:, :, :, :Wo]
    y = y.astype(jnp.float32)
    return jnp.maximum(y * scale[None, :, None, None]
                       + shift[None, :, None, None], 0.0)


# -----------------------------------------------------------------------------
# Pure-JAX reference (matches the PyTorch forward in training-mode BN).
# -----------------------------------------------------------------------------
def reference(x, w, b, gamma, beta, eps=1e-3):
    conv = lax.conv_general_dilated(
        x, w, window_strides=(2, 2), padding=((1, 1), (1, 1)),
        dimension_numbers=("NCHW", "OIHW", "NCHW")) + b[None, :, None, None]
    pool = lax.reduce_window(x, -jnp.inf, lax.max,
                             (1, 1, 2, 2), (1, 1, 2, 2), "VALID")
    y = jnp.concatenate([conv, pool], axis=1)
    mean = y.mean(axis=(0, 2, 3), keepdims=True)
    var = ((y - mean) ** 2).mean(axis=(0, 2, 3), keepdims=True)
    yn = (y - mean) / jnp.sqrt(var + eps)
    yn = yn * gamma[None, :, None, None] + beta[None, :, None, None]
    return jnp.maximum(yn, 0.0)


if __name__ == "__main__":
    ninput, noutput = 4, 16
    N, H, W = 2, 16, 16
    Cconv = noutput - ninput

    key = jax.random.PRNGKey(0)
    kx, kw, kb, kg, kbt = jax.random.split(key, 5)

    x = jax.random.normal(kx, (N, ninput, H, W), jnp.float32)
    w_conv = 0.1 * jax.random.normal(kw, (Cconv, ninput, 3, 3), jnp.float32)
    b_conv = 0.1 * jax.random.normal(kb, (Cconv,), jnp.float32)
    gamma = 1.0 + 0.1 * jax.random.normal(kg, (noutput,), jnp.float32)
    beta = 0.1 * jax.random.normal(kbt, (noutput,), jnp.float32)

    out = downsampler_block(x, w_conv, b_conv, gamma, beta)
    out = jax.block_until_ready(out)

    ref = reference(x, w_conv, b_conv, gamma, beta)
    assert out.shape == (N, noutput, H // 2, W // 2), out.shape
    # bf16 input/matmul path -> tolerance widened accordingly.
    assert jnp.allclose(out, ref, rtol=5e-2, atol=5e-2), (
        float(jnp.max(jnp.abs(out - ref))))

    print("KERNEL_OK")
</pallas_src>

<mosaic_0001>
module attributes {stable_mosaic.version = 11 : i64} {
  func.func @_conv_pool_stats_kernel(%arg0: i32, %arg1: i32, %arg2: memref<1x4x4x128xbf16, #tpu.memory_space<vmem>>, %arg3: memref<1x4x4x128xbf16, #tpu.memory_space<vmem>>, %arg4: memref<1x128xf32, #tpu.memory_space<vmem>>, %arg5: memref<12x36xbf16, #tpu.memory_space<vmem>>, %arg6: memref<1x16x128xbf16, #tpu.memory_space<vmem>>, %arg7: memref<1x1x16x2xf32, #tpu.memory_space<vmem>>, %arg8: memref<36x128xbf16, #tpu.memory_space<vmem>>) attributes {dimension_semantics = [#tpu.dimension_semantics<parallel>, #tpu.dimension_semantics<parallel>], iteration_bounds = array<i64: 2, 1>, scalar_prefetch = 0 : i64, scratch_operands = 1 : i64, tpu.core_type = #tpu.core_type<tc>, window_params = [{transform_indices = @transform_0, window_bounds = array<i64: 1, 4, 4, 128>}, {transform_indices = @transform_1, window_bounds = array<i64: 1, 4, 4, 128>}, {transform_indices = @transform_2, window_bounds = array<i64: 1, 128>}, {pipeline_mode = #tpu.pipeline_mode<synchronous>, transform_indices = @transform_3, window_bounds = array<i64: 12, 36>}, {transform_indices = @transform_4, window_bounds = array<i64: 1, 16, 128>}, {transform_indices = @transform_5, window_bounds = array<i64: 1, 1, 16, 2>}]} {
    %c0 = arith.constant 0 : index
    %c0_0 = arith.constant 0 : index
    %c0_1 = arith.constant 0 : index
    %c0_2 = arith.constant 0 : index
    %0 = vector.load %arg2[%c0, %c0_0, %c0_1, %c0_2] : memref<1x4x4x128xbf16, #tpu.memory_space<vmem>>, vector<1x4x4x128xbf16>
    %1 = vector.shape_cast %0 : vector<1x4x4x128xbf16> to vector<4x4x128xbf16>
    %c0_3 = arith.constant 0 : index
    %c0_4 = arith.constant 0 : index
    %c0_5 = arith.constant 0 : index
    %c0_6 = arith.constant 0 : index
    %2 = vector.load %arg3[%c0_3, %c0_4, %c0_5, %c0_6] : memref<1x4x4x128xbf16, #tpu.memory_space<vmem>>, vector<1x4x4x128xbf16>
    %3 = vector.shape_cast %2 : vector<1x4x4x128xbf16> to vector<4x4x128xbf16>
    %4 = tpu.concatenate %1, %3 in 2 : vector<4x4x128xbf16>, vector<4x4x128xbf16> -> vector<4x4x256xbf16>
    %5 = vector.extract_strided_slice %4 {offsets = [0, 0, 0], sizes = [1, 4, 128], strides = [1, 1, 1]} : vector<4x4x256xbf16> to vector<1x4x128xbf16>
    %6 = vector.shape_cast %5 : vector<1x4x128xbf16> to vector<4x128xbf16>
    %c0_7 = arith.constant 0 : index
    %c0_8 = arith.constant 0 : index
    %7 = vector.load %arg8[%c0_7, %c0_8] : memref<36x128xbf16, #tpu.memory_space<vmem>>, vector<4x128xbf16>
    tpu.vector_store %arg8[%c0_7, %c0_8], %6 {strides = array<i32>} : memref<36x128xbf16, #tpu.memory_space<vmem>>, vector<4x128xbf16>,
    %8 = vector.extract_strided_slice %4 {offsets = [1, 0, 0], sizes = [1, 4, 128], strides = [1, 1, 1]} : vector<4x4x256xbf16> to vector<1x4x128xbf16>
    %9 = vector.shape_cast %8 : vector<1x4x128xbf16> to vector<4x128xbf16>
    %c4 = arith.constant 4 : index
    %c0_9 = arith.constant 0 : index
    %10 = vector.load %arg8[%c4, %c0_9] : memref<36x128xbf16, #tpu.memory_space<vmem>>, vector<4x128xbf16>
    tpu.vector_store %arg8[%c4, %c0_9], %9 {strides = array<i32>} : memref<36x128xbf16, #tpu.memory_space<vmem>>, vector<4x128xbf16>,
    %11 = vector.extract_strided_slice %4 {offsets = [0, 0, 1], sizes = [1, 4, 128], strides = [1, 1, 1]} : vector<4x4x256xbf16> to vector<1x4x128xbf16>
    %12 = vector.shape_cast %11 : vector<1x4x128xbf16> to vector<4x128xbf16>
    %c8 = arith.constant 8 : index
    %c0_10 = arith.constant 0 : index
    %13 = vector.load %arg8[%c8, %c0_10] : memref<36x128xbf16, #tpu.memory_space<vmem>>, vector<4x128xbf16>
    tpu.vector_store %arg8[%c8, %c0_10], %12 {strides = array<i32>} : memref<36x128xbf16, #tpu.memory_space<vmem>>, vector<4x128xbf16>,
    %14 = vector.extract_strided_slice %4 {offsets = [2, 0, 0], sizes = [1, 4, 128], strides = [1, 1, 1]} : vector<4x4x256xbf16> to vector<1x4x128xbf16>
    %15 = vector.shape_cast %14 : vector<1x4x128xbf16> to vector<4x128xbf16>
    %c12 = arith.constant 12 : index
    %c0_11 = arith.constant 0 : index
    %16 = vector.load %arg8[%c12, %c0_11] : memref<36x128xbf16, #tpu.memory_space<vmem>>, vector<4x128xbf16>
    tpu.vector_store %arg8[%c12, %c0_11], %15 {strides = array<i32>} : memref<36x128xbf16, #tpu.memory_space<vmem>>, vector<4x128xbf16>,
    %17 = vector.extract_strided_slice %4 {offsets = [3, 0, 0], sizes = [1, 4, 128], strides = [1, 1, 1]} : vector<4x4x256xbf16> to vector<1x4x128xbf16>
    %18 = vector.shape_cast %17 : vector<1x4x128xbf16> to vector<4x128xbf16>
    %c16 = arith.constant 16 : index
    %c0_12 = arith.constant 0 : index
    %19 = vector.load %arg8[%c16, %c0_12] : memref<36x128xbf16, #tpu.memory_space<vmem>>, vector<4x128xbf16>
    tpu.vector_store %arg8[%c16, %c0_12], %18 {strides = array<i32>} : memref<36x128xbf16, #tpu.memory_space<vmem>>, vector<4x128xbf16>,
    %20 = vector.extract_strided_slice %4 {offsets = [2, 0, 1], sizes = [1, 4, 128], strides = [1, 1, 1]} : vector<4x4x256xbf16> to vector<1x4x128xbf16>
    %21 = vector.shape_cast %20 : vector<1x4x128xbf16> to vector<4x128xbf16>
    %c20 = arith.constant 20 : index
    %c0_13 = arith.constant 0 : index
    %22 = vector.load %arg8[%c20, %c0_13] : memref<36x128xbf16, #tpu.memory_space<vmem>>, vector<4x128xbf16>
    tpu.vector_store %arg8[%c20, %c0_13], %21 {strides = array<i32>} : memref<36x128xbf16, #tpu.memory_space<vmem>>, vector<4x128xbf16>,
    %23 = arith.maximumf %18, %21 : vector<4x128xbf16>
    %24 = vector.extract_strided_slice %4 {offsets = [0, 0, 9], sizes = [1, 4, 128], strides = [1, 1, 1]} : vector<4x4x256xbf16> to vector<1x4x128xbf16>
    %25 = vector.shape_cast %24 : vector<1x4x128xbf16> to vector<4x128xbf16>
    %c24 = arith.constant 24 : index
    %c0_14 = arith.constant 0 : index
    %26 = vector.load %arg8[%c24, %c0_14] : memref<36x128xbf16, #tpu.memory_space<vmem>>, vector<4x128xbf16>
    tpu.vector_store %arg8[%c24, %c0_14], %25 {strides = array<i32>} : memref<36x128xbf16, #tpu.memory_space<vmem>>, vector<4x128xbf16>,
    %27 = vector.extract_strided_slice %4 {offsets = [1, 0, 9], sizes = [1, 4, 128], strides = [1, 1, 1]} : vector<4x4x256xbf16> to vector<1x4x128xbf16>
    %28 = vector.shape_cast %27 : vector<1x4x128xbf16> to vector<4x128xbf16>
    %c28 = arith.constant 28 : index
    %c0_15 = arith.constant 0 : index
    %29 = vector.load %arg8[%c28, %c0_15] : memref<36x128xbf16, #tpu.memory_space<vmem>>, vector<4x128xbf16>
    tpu.vector_store %arg8[%c28, %c0_15], %28 {strides = array<i32>} : memref<36x128xbf16, #tpu.memory_space<vmem>>, vector<4x128xbf16>,
    %30 = arith.maximumf %23, %28 : vector<4x128xbf16>
    %31 = vector.extract_strided_slice %4 {offsets = [0, 0, 10], sizes = [1, 4, 128], strides = [1, 1, 1]} : vector<4x4x256xbf16> to vector<1x4x128xbf16>
    %32 = vector.shape_cast %31 : vector<1x4x128xbf16> to vector<4x128xbf16>
    %c32 = arith.constant 32 : index
    %c0_16 = arith.constant 0 : index
    %33 = vector.load %arg8[%c32, %c0_16] : memref<36x128xbf16, #tpu.memory_space<vmem>>, vector<4x128xbf16>
    tpu.vector_store %arg8[%c32, %c0_16], %32 {strides = array<i32>} : memref<36x128xbf16, #tpu.memory_space<vmem>>, vector<4x128xbf16>,
    %34 = arith.maximumf %30, %32 : vector<4x128xbf16>
    %c0_17 = arith.constant 0 : index
    %c0_18 = arith.constant 0 : index
    %35 = vector.load %arg5[%c0_17, %c0_18] : memref<12x36xbf16, #tpu.memory_space<vmem>>, vector<12x36xbf16>
    %c0_19 = arith.constant 0 : index
    %c0_20 = arith.constant 0 : index
    %36 = vector.load %arg8[%c0_19, %c0_20] : memref<36x128xbf16, #tpu.memory_space<vmem>>, vector<36x128xbf16>
    %cst = arith.constant dense<0.000000e+00> : vector<12x128xf32>
    %37 = tpu.matmul %35, %36, %cst {dimension_numbers = #tpu.dot_dimension_numbers<[1], [0], [0], [1], [0, 0, 1, 1], [], []>} : vector<12x36xbf16>, vector<36x128xbf16>, vector<12x128xf32> -> vector<12x128xf32>
    %38 = arith.truncf %37 : vector<12x128xf32> to vector<12x128xbf16>
    %c0_21 = arith.constant 0 : index
    %c0_22 = arith.constant 0 : index
    %c0_23 = arith.constant 0 : index
    %39 = vector.load %arg6[%c0_21, %c0_22, %c0_23] : memref<1x16x128xbf16, #tpu.memory_space<vmem>>, vector<1x12x128xbf16>
    %40 = vector.shape_cast %39 : vector<1x12x128xbf16> to vector<12x128xbf16>
    %41 = vector.shape_cast %38 : vector<12x128xbf16> to vector<1x12x128xbf16>
    tpu.vector_store %arg6[%c0_21, %c0_22, %c0_23], %41 {strides = array<i32>} : memref<1x16x128xbf16, #tpu.memory_space<vmem>>, vector<1x12x128xbf16>,
    %c0_24 = arith.constant 0 : index
    %c12_25 = arith.constant 12 : index
    %c0_26 = arith.constant 0 : index
    %42 = vector.load %arg6[%c0_24, %c12_25, %c0_26] : memref<1x16x128xbf16, #tpu.memory_space<vmem>>, vector<1x4x128xbf16>
    %43 = vector.shape_cast %42 : vector<1x4x128xbf16> to vector<4x128xbf16>
    %44 = vector.shape_cast %34 : vector<4x128xbf16> to vector<1x4x128xbf16>
    tpu.vector_store %arg6[%c0_24, %c12_25, %c0_26], %44 {strides = array<i32>} : memref<1x16x128xbf16, #tpu.memory_space<vmem>>, vector<1x4x128xbf16>,
    %c0_27 = arith.constant 0 : index
    %c0_28 = arith.constant 0 : index
    %45 = vector.load %arg4[%c0_27, %c0_28] : memref<1x128xf32, #tpu.memory_space<vmem>>, vector<1x128xf32>
    %46 = arith.extf %38 : vector<12x128xbf16> to vector<12x128xf32>
    %47 = arith.extf %34 : vector<4x128xbf16> to vector<4x128xf32>
    %48 = vector.broadcast %45 : vector<1x128xf32> to vector<12x128xf32>
    %49 = arith.mulf %46, %48 : vector<12x128xf32>
    %50 = vector.broadcast %45 : vector<1x128xf32> to vector<4x128xf32>
    %51 = arith.mulf %47, %50 : vector<4x128xf32>
    %cst_29 = arith.constant dense<0.000000e+00> : vector<12xf32>
    %52 = vector.multi_reduction <add>, %49, %cst_29 [1] : vector<12x128xf32> to vector<12xf32>
    %53 = vector.shape_cast %52 : vector<12xf32> to vector<12x1xf32>
    %54 = arith.mulf %49, %46 : vector<12x128xf32>
    %cst_30 = arith.constant dense<0.000000e+00> : vector<12xf32>
    %55 = vector.multi_reduction <add>, %54, %cst_30 [1] : vector<12x128xf32> to vector<12xf32>
    %56 = vector.shape_cast %55 : vector<12xf32> to vector<12x1xf32>
    %57 = tpu.concatenate %53, %56 in 1 : vector<12x1xf32>, vector<12x1xf32> -> vector<12x2xf32>
    %c0_31 = arith.constant 0 : index
    %c0_32 = arith.constant 0 : index
    %c0_33 = arith.constant 0 : index
    %c0_34 = arith.constant 0 : index
    %58 = vector.load %arg7[%c0_31, %c0_32, %c0_33, %c0_34] : memref<1x1x16x2xf32, #tpu.memory_space<vmem>>, vector<1x1x12x2xf32>
    %59 = vector.shape_cast %58 : vector<1x1x12x2xf32> to vector<12x2xf32>
    %60 = vector.shape_cast %57 : vector<12x2xf32> to vector<1x1x12x2xf32>
    tpu.vector_store %arg7[%c0_31, %c0_32, %c0_33, %c0_34], %60 {strides = array<i32>} : memref<1x1x16x2xf32, #tpu.memory_space<vmem>>, vector<1x1x12x2xf32>,
    %cst_35 = arith.constant dense<0.000000e+00> : vector<4xf32>
    %61 = vector.multi_reduction <add>, %51, %cst_35 [1] : vector<4x128xf32> to vector<4xf32>
    %62 = vector.shape_cast %61 : vector<4xf32> to vector<4x1xf32>
    %63 = arith.mulf %51, %47 : vector<4x128xf32>
    %cst_36 = arith.constant dense<0.000000e+00> : vector<4xf32>
    %64 = vector.multi_reduction <add>, %63, %cst_36 [1] : vector<4x128xf32> to vector<4xf32>
    %65 = vector.shape_cast %64 : vector<4xf32> to vector<4x1xf32>
    %66 = tpu.concatenate %62, %65 in 1 : vector<4x1xf32>, vector<4x1xf32> -> vector<4x2xf32>
    %c0_37 = arith.constant 0 : index
    %c0_38 = arith.constant 0 : index
    %c12_39 = arith.constant 12 : index
    %c0_40 = arith.constant 0 : index
    %67 = vector.load %arg7[%c0_37, %c0_38, %c12_39, %c0_40] : memref<1x1x16x2xf32, #tpu.memory_space<vmem>>, vector<1x1x4x2xf32>
    %68 = vector.shape_cast %67 : vector<1x1x4x2xf32> to vector<4x2xf32>
    %69 = vector.shape_cast %66 : vector<4x2xf32> to vector<1x1x4x2xf32>
    tpu.vector_store %arg7[%c0_37, %c0_38, %c12_39, %c0_40], %69 {strides = array<i32>} : memref<1x1x16x2xf32, #tpu.memory_space<vmem>>, vector<1x1x4x2xf32>,
    return
  }
  func.func @transform_0(%arg0: i32, %arg1: i32) -> (i32, i32, i32, i32) {
    %c0_i32 = arith.constant 0 : i32
    %c0_i32_0 = arith.constant 0 : i32
    %c0_i32_1 = arith.constant 0 : i32
    return %arg0, %c0_i32, %c0_i32_0, %arg1 : i32, i32, i32, i32
  }
  func.func @transform_1(%arg0: i32, %arg1: i32) -> (i32, i32, i32, i32) {
    %c1_i32 = arith.constant 1 : i32
    %0 = arith.addi %arg1, %c1_i32 : i32
    %c1_i32_0 = arith.constant 1 : i32
    %1 = arith.muli %0, %c1_i32_0 : i32
    %c0_i32 = arith.constant 0 : i32
    %c0_i32_1 = arith.constant 0 : i32
    %c0_i32_2 = arith.constant 0 : i32
    return %arg0, %c0_i32, %c0_i32_1, %1 : i32, i32, i32, i32
  }
  func.func @transform_2(%arg0: i32, %arg1: i32) -> (i32, i32) {
    %c0_i32 = arith.constant 0 : i32
    %c0_i32_0 = arith.constant 0 : i32
    return %c0_i32, %arg1 : i32, i32
  }
  func.func @transform_3(%arg0: i32, %arg1: i32) -> (i32, i32) {
    %c0_i32 = arith.constant 0 : i32
    %c0_i32_0 = arith.constant 0 : i32
    %c0_i32_1 = arith.constant 0 : i32
    return %c0_i32, %c0_i32_0 : i32, i32
  }
  func.func @transform_4(%arg0: i32, %arg1: i32) -> (i32, i32, i32) {
    %c0_i32 = arith.constant 0 : i32
    %c0_i32_0 = arith.constant 0 : i32
    return %arg0, %c0_i32, %arg1 : i32, i32, i32
  }
  func.func @transform_5(%arg0: i32, %arg1: i32) -> (i32, i32, i32, i32) {
    %c0_i32 = arith.constant 0 : i32
    %c0_i32_0 = arith.constant 0 : i32
    %c0_i32_1 = arith.constant 0 : i32
    return %arg0, %arg1, %c0_i32, %c0_i32_0 : i32, i32, i32, i32
  }
}

</mosaic_0001>

<bundles_post_ra>
// kernel: downsampler_block.1
= control target key start
LH: loop header
LB: loop body
LE: loop exit
PB: predicated region body
PF: predicated region fallthrough
CT: control target
= control target key end

     0   :  { %s1003_s18 = smov 0   ;;  %s1005_s19 = smov 0   ;;  %s1107_s0 = inlined_call_operand.vmem [shape: bf16[2,4,4,256], index: 0, kind: input, shape index: {}, may-alias: {0,1}]   ;;  %s1108_s1 = inlined_call_operand.vmem [shape: bf16[2,4,4,256], index: 1, kind: input, shape index: {}, may-alias: {0,1}]   ;;  %s1109_s2 = inlined_call_operand.vmem [shape: f32[1,128], index: 2, kind: input, shape index: {}]   ;;  %s1110_s3 = inlined_call_operand.vmem [shape: bf16[12,36], index: 3, kind: input, shape index: {}]   ;;  %s1111_s4 = inlined_call_operand.vmem [shape: bf16[2,16,128], index: 4, kind: output, shape index: {0}]   ;;  %s1112_s5 = inlined_call_operand.vmem [shape: f32[2,1,16,2], index: 5, kind: output, shape index: {1}]  }
   0x1   :  { %s1007_s20 = smov 0   ;;  %s1009_s21 = smov 0  }
   0x2   :  { %s1011_s22 = smov 0  }
   0x3 LB: > { %s28_s23 = sadd.s32 1, %s962_s21  ;;  %p44_p1 = scmp.ne.s32.totalorder %s954_s19, %s950_s18  ;;  %s966_s22 = sphi %s1011_s22, %s16_s22   ;;  %s962_s21 = sphi %s1009_s21, %s1117_s21   ;;  %s958_s20 = sphi %s1007_s20, %s1116_s20   ;;  %s954_s19 = sphi %s1005_s19, %s1115_s19   ;;  %s950_s18 = sphi %s1003_s18, %s1114_s18  }
   0x4   : > { %p30_p0 = scmp.ge.s32.totalorder %s28_s23, 2  ;;  %p45_p2 = scmp.eq.s32.totalorder %s966_s22, 0 }
   0x5   : > { %s37_s26 = sadd.s32 1, %s954_s19  ;;  %p823_p5 = scmp.ge.s32.totalorder %s966_s22, 2 }
   0x6   : > { %s1119_s23 = smov (%p30_p0, %s28_s23), 0  ;;  %p1034_p3 = por %p45_p2, %p44_p1 }
   0x7   : > { %s32_s25 = ssub.s32 %s962_s21, %s1119_s23  ;;  %212 = sbr.rel (%p823_p5) target bundleno = 24 (0x18), region = 24 }
   0x8   : > { %p35_p4 = scmp.eq.s32.totalorder %s32_s25, 0 }
   0xa   : > { %s1042_s27 = scalar_select %p35_p4, %s954_s19, %s37_s26  }
   0xc   : > { %215 = sbr.rel (!%p1034_p3) target bundleno = 18 (0x12), region = 28  ;;  %s217_s28 = sand.u32 (%p1034_p3), 1, %s954_s19  }
   0xd   : > { %s857_s29 = sshll.u32 (%p1034_p3), %s962_s21, 4  ;;  %s824_s30 = sshll.u32 (%p1034_p3), %s217_s28, 3 }
   0xe   : > { %s223_s8 = scalar_lea.vmem (%p1034_p3), %s1107_s0, %s857_s29  ;;  %s219_s9 = scalar_lea.vmem (%p1034_p3), [#allocation3], %s824_s30 }
   0xf   : > { %v240_v0 = vld [vmem:[%s223_s8] sm:$0x3] (%p1034_p3)  ;;  %v242_v1 = vld [vmem:[%s223_s8 + $0x4] sm:$0x3] (%p1034_p3)  ;;  %v244_v2 = vld [vmem:[%s223_s8 + $0x8] sm:$0x3] (%p1034_p3) }
  0x10   : > { %241 = vst [vmem:[%s219_s9] sm:$0x3] (%p1034_p3), %v240_v0  ;;  %243 = vst [vmem:[%s219_s9 + $0x2] sm:$0x3] (%p1034_p3), %v242_v1  ;;  %v246_v3 = vld [vmem:[%s223_s8 + $0xc] sm:$0x3] (%p1034_p3) }
  0x11   : > { %245 = vst [vmem:[%s219_s9 + $0x4] sm:$0x3] %v244_v2  ;;  %247 = vst [vmem:[%s219_s9 + $0x6] sm:$0x3] %v246_v3 }
  0x12 PF: > { %279 = sbr.rel (!%p1034_p3) target bundleno = 24 (0x18), region = 69  ;;  %s281_s10 = sand.u32 (%p1034_p3), 1, %s954_s19  }
  0x13   : > { %s858_s11 = sshll.u32 (%p1034_p3), %s962_s21, 4  ;;  %s827_s12 = sshll.u32 (%p1034_p3), %s281_s10, 3 }
  0x14   : > { %s710_s15 = scalar_lea.vmem (%p1034_p3), %s1108_s1, %s858_s11  ;;  %s283_s16 = scalar_lea.vmem (%p1034_p3), [#allocation4], %s827_s12 }
  0x15   : > { %v830_v4 = vld [vmem:[%s710_s15 + $0x2] sm:$0x3] (%p1034_p3)  ;;  %v831_v5 = vld [vmem:[%s710_s15 + $0x6] sm:$0x3] (%p1034_p3)  ;;  %v832_v6 = vld [vmem:[%s710_s15 + $0xa] sm:$0x3] (%p1034_p3) }
  0x16   : > { %306 = vst [vmem:[%s283_s16] sm:$0x3] (%p1034_p3), %v830_v4  ;;  %308 = vst [vmem:[%s283_s16 + $0x2] sm:$0x3] (%p1034_p3), %v831_v5  ;;  %v833_v7 = vld [vmem:[%s710_s15 + $0xe] sm:$0x3] (%p1034_p3) }
  0x17   : > { %310 = vst [vmem:[%s283_s16 + $0x4] sm:$0x3] %v832_v6  ;;  %312 = vst [vmem:[%s283_s16 + $0x6] sm:$0x3] %v833_v7 }
  0x18 PF: > { %p834_p6 = scmp.ge.s32.totalorder %s966_s22, 1  ;;  %p343_p7 = scmp.lt.s32.totalorder %s966_s22, 3 }
  0x1a   : > { %p344_p8 = pnand %p834_p6, %p343_p7 }
  0x1b   : > { %s350_s17 = sand.u32 (!%p344_p8), 1, %s950_s18   ;;  %s968_s28 = smov (!%p344_p8), 119  }
  0x1c   : > { %347 = sbr.rel (%p344_p8) target bundleno = 526 (0x20e), region = 110  ;;  %s835_s24 = sshll.u32 (!%p344_p8), %s350_s17, 3 }
  0x1d   : > { %s352_s25 = scalar_lea.vmem (!%p344_p8), [#allocation3], %s835_s24  ;;  %s359_s26 = scalar_lea.vmem (!%p344_p8), [#allocation4], %s835_s24 }
  0x1e   : > { %s969_s18 = smov (!%p344_p8), 118   ;;  %s971_s29 = smov (!%p344_p8), 127  }
  0x1f   : > { %p407_p9 = scmp.lt.s32.totalorder (!%p344_p8), %s958_s20, 1 }
  0x21   : > { %v425_v8 = vld [vmem:[%s352_s25] sm:$0x3]  ;;  %v1062_v9 = vld [vmem:[%s352_s25 + $0x6] sm:$0x3]  ;;  %v429_v10 = vld [vmem:[%s359_s26] sm:$0x3] }
  0x22   : > { %v842_v11 = vcombine.low %v425_v8, %v429_v10  ;;  %457 = vst [vmem:[#allocation2 + $0x8] sm:$0x3] %v1062_v9  ;;  %432 = vst [vmem:[#allocation2] sm:$0x3] %v425_v8  ;;  %v426_v12 = vld [vmem:[%s352_s25 + $0x2] sm:$0x3] }
  0x23   : > { %v430_v13 = vld [vmem:[%s359_s26 + $0x2] sm:$0x3]  ;;  %v427_v14 = vld [vmem:[%s352_s25 + $0x4] sm:$0x3]  ;;  %v841_v15 = vcombine.low %v426_v12, %v426_v12  ;;  %v431_v17 = vld [vmem:[%s359_s26 + $0x4] sm:$0x3] }
  0x24   : > { %v845_v16 = vcombine.low %v426_v12, %v430_v13  ;;  %v843_v18 = vcombine.low %v427_v14, %v427_v14  ;;  %475 = vrot.lane.b32.xlu1 %v842_v11, %s968_s28  ;;  %499 = vrot.lane.b32.xlu0 %v842_v11, %s969_s18  ;;  %v844_v19 = vcombine.low %v427_v14, %v431_v17  ;;  %v970_v23 = vmov 0.0   ;;  %v927_v52 = vld [vmem:[%s1110_s3] sm:$0x3f]   ;;  %s1121_s20 = smov (!%p407_p9, %s958_s20), 1 }
  0x25   : > { %v436_v20 = vrot.slane %v841_v15, 6  ;;  %867 = vmatprep.subr.bf16.mxu0 %v970_v23  ;;  %vm972_vm0 = vmmov 0   ;;  %vm478_vm1 = vcmask 973824   ;;  %vm502_vm2 = vcmask 965632   ;;  %s859_s7 = sshll.u32 %s1121_s20, 3  ;;  %s860_s13 = sshll.u32 %s1121_s20, 4 }
  0x26   : > { %v485_v21 = vrot.slane %v845_v16, 6  ;;  %v454_v22 = vrot.slane %v843_v18, 6  ;;  %v461_v24 = vrot.slane %v844_v19, 6  ;;  %873 = vmatprep.mubr.msk.bf16.mxu0 %vm972_vm0, %v970_v23  ;;  %vm447_vm3 = vcmask 1039360   ;;  %s414_s10 = scalar_lea.vmem %s1111_s4, %s859_s7  ;;  %v854_v2 = vld [vmem:[%s1109_s2] ss:$0 sm:$0xff]  ;;  %s423_s16 = scalar_lea.vmem %s1112_s5, %s860_s13 }
  0x27   : > { %438 = vst [vmem:[#allocation2] sm:$0xc] %v436_v20  ;;  %vm544_vm4 = vcmask 1041408   ;;  %vm540_vm5 = vcmask 293888   ;;  %vm620_vm6 = vcmask 1043456   ;;  %vm631_vm7 = vcmask 7168  }
  0x28   : > { %456 = vst [vmem:[#allocation2 + $0x4] sm:$0xc] %v454_v22  ;;  %486 = vrot.lane.b32.xlu1 %v485_v21, %s968_s28  ;;  %462 = vrot.lane.b32.xlu0 %v461_v24, %s971_s29  ;;  %vm636_vm8 = vcmask 11264   ;;  %vm634_vm9 = vcmask 15360  }
  0x2c   : > { %444 = vrot.lane.b32.xlu0 %v842_v11, %s971_s29  ;;  %468 = vrot.lane.b32.xlu1 %v427_v14, %s971_s29 }
  0x30   : > { %470 = vrot.lane.b32.xlu0 %v431_v17, %s971_s29  ;;  %492 = vrot.lane.b32.xlu1 %v426_v12, %s968_s28 }
  0x34   : > { %494 = vrot.lane.b32.xlu0 %v430_v13, %s968_s28  ;;  %506 = vrot.lane.b32.xlu1 %v425_v8, %s969_s18 }
  0x38   : > { %508 = vrot.lane.b32.xlu0 %v429_v10, %s969_s18 }
  0x96   : > { %v476_v25 = vpop.permute.xlu1 %475  ;;  %v500_v26 = vpop.permute.xlu0 %499 }
  0x97   : > { %v477_v27 = vrot.slane %v476_v25, 4  ;;  %v501_v28 = vrot.slane %v500_v26, 4 }
  0x99   : > { %v479_v29 = vsel %vm478_vm1, %v476_v25, %v477_v27  ;;  %v503_v30 = vsel %vm502_vm2, %v500_v26, %v501_v28 }
  0x9a   : > { %481 = vst [vmem:[#allocation2 + $0xc] sm:$0x3] %v479_v29  ;;  %505 = vst [vmem:[#allocation2 + $0x10] sm:$0x3] %v503_v30  ;;  %v487_v31 = vpop.permute.xlu1 %486  ;;  %v463_v32 = vpop.permute.xlu0 %462 }
  0x9b   : > { %v488_v33 = vrot.slane %v487_v31, 4  ;;  %v464_v34 = vrot.slane %v463_v32, 4 }
  0x9d   : > { %v489_v35 = vsel %vm478_vm1, %v487_v31, %v488_v33  ;;  %v465_v36 = vsel %vm447_vm3, %v463_v32, %v464_v34 }
  0x9e   : > { %491 = vst [vmem:[#allocation2 + $0xc] sm:$0xc] %v489_v35  ;;  %467 = vst [vmem:[#allocation2 + $0x8] sm:$0xc] %v465_v36  ;;  %v445_v37 = vpop.permute.xlu0 %444  ;;  %v469_v39 = vpop.permute.xlu1 %468 }
  0x9f   : > { %v446_v38 = vrot.slane %v445_v37, 4 }
  0xa1   : > { %v448_v40 = vsel %vm447_vm3, %v445_v37, %v446_v38  ;;  %v924_v41 = vld [vmem:[#allocation2 + $0x10] ss:$0 sps:$4 sm:$0x33]  }
  0xa2   : > { %450 = vst [vmem:[#allocation2 + $0x4] sm:$0x3] %v448_v40  ;;  %v471_v42 = vpop.permute.xlu0 %470  ;;  %v546_v43 = vsel %vm544_vm4, %v924_v41, 0  ;;  %v493_v47 = vpop.permute.xlu1 %492 }
  0xa3   : > { %v472_v44 = vsel %vm447_vm3, %v469_v39, %v471_v42  ;;  %868 = vmatpush3.bf16.msra.mxu0 %v546_v43 }
  0xa4   : > { %v474_v45 = vmax.bf16 %v472_v44, %v1062_v9  ;;  %869 = vmatprep.subr.bf16.mxu0 %v970_v23 }
  0xa5   : > { %v925_v46 = vld [vmem:[#allocation2 + $0x8] sm:$0xff]  }
  0xa6   : > { %v495_v48 = vpop.permute.xlu0 %494  ;;  %v507_v53 = vpop.permute.xlu1 %506 }
  0xa7   : > { %v496_v49 = vsel %vm478_vm1, %v493_v47, %v495_v48  ;;  %870 = vmatpush3.bf16.msra.mxu0 %v925_v46 }
  0xa8   : > { %v498_v50 = vmax.bf16 %v496_v49, %v474_v45  ;;  %871 = vmatprep.subr.bf16.mxu0 %v970_v23 }
  0xa9   : > { %v926_v51 = vld [vmem:[#allocation2] sm:$0xff]  }
  0xaa   : > { %v509_v54 = vpop.permute.xlu0 %508 }
  0xab   : > { %872 = vmatpush3.bf16.msra.mxu0 %v926_v51  ;;  %v510_v55 = vsel %vm502_vm2, %v507_v53, %v509_v54 }
  0xac   : > { %v512_v56 = vmax.bf16 %v510_v55, %v498_v50 }
  0xae   : > { %874 = vmatmul.mubr.msk.bf16.vlgmr.msra.gmra.mxu0 %vm540_vm5, %v927_v52  ;;  %v853_v57 = vcombine.low %v512_v56, %v512_v56  ;;  %v608_v3 = vunpack.c.l.bf16 %v512_v56 }
  0xb0   : > { %v602_v58 = vrot.slane %v853_v57, 6  ;;  %v617_v8 = vmul.f32 %v854_v2, %v608_v3 }
  0xb2   : > { %604 = vst [vmem:[%s414_s10 + $0x4] sm:$0xc] %v602_v58  ;;  %v641_v13 = vmul.f32 %v617_v8, %v608_v3  ;;  %v638_v15 = vsel %vm620_vm6, %v617_v8, 0.0 }
  0xb4   : > { %v642_v14 = vsel %vm620_vm6, %v641_v13, 0.0 }
 0x16e   : > { %v582_v59 = vpop.f32.mrf.mxu0 }
 0x16f   : > { %v861_v60 = vpack.c.bf16 %v582_v59, %v582_v59 }
 0x170   : > { %v875_v61 = vpop.f32.mrf.mxu0 }
 0x171   : > { %597 = vst [vmem:[%s414_s10] sm:$0xf] %v861_v60 }
 0x172   : > { %v585_v62 = vpop.f32.mrf.mxu0 }
 0x173   : > { %v589_v63 = vpack.c.bf16 %v585_v62, %v582_v59  ;;  %v862_v0 = vpack.c.bf16 %v585_v62, %v585_v62 }
 0x174   : > { %v876_v1 = vpop.f32.mrf.mxu0 }
 0x175   : > { %598 = vst [vmem:[%s414_s10 + $0x4] sm:$0x3] %v862_v0  ;;  %v607_v4 = vunpack.c.h.bf16 %v589_v63  ;;  %v606_v5 = vunpack.c.l.bf16 %v589_v63 }
 0x177   : > { %v615_v6 = vmul.f32 %v854_v2, %v606_v5  ;;  %v616_v7 = vmul.f32 %v854_v2, %v607_v4 }
 0x179   : > { %618 = vadd.xlane.f32.xlu1 %v615_v6  ;;  %v621_v9 = vsel %vm620_vm6, %v616_v7, 0.0  ;;  %v625_v10 = vmul.f32 %v616_v7, %v607_v4  ;;  %v624_v12 = vmul.f32 %v615_v6, %v606_v5 }
 0x17a   : > { %622 = vadd.xlane.f32.xlu0 %v621_v9 }
 0x17b   : > { %v628_v11 = vsel %vm620_vm6, %v625_v10, 0.0 }
 0x17d   : > { %629 = vadd.xlane.f32.xlu1 %v628_v11 }
 0x17e   : > { %626 = vadd.xlane.f32.xlu0 %v624_v12 }
 0x181   : > { %643 = vadd.xlane.f32.xlu1 %v642_v14 }
 0x182   : > { %639 = vadd.xlane.f32.xlu0 %v638_v15 }
 0x202   : > { %v619_v16 = vpop.xlane.xlu1 %618 }
 0x203   : > { %v623_v17 = vpop.xlane.xlu0 %622 }
 0x206   : > { %v630_v18 = vpop.xlane.xlu1 %629 }
 0x207   : > { %v633_v19 = vsel %vm631_vm7, %v623_v17, %v630_v18  ;;  %v627_v20 = vpop.xlane.xlu0 %626 }
 0x208   : > { %637 = vst.msk [vmem:[%s423_s16 + $0x8] sm:$0xf] %vm636_vm8, %v633_v19  ;;  %v632_v21 = vsel %vm631_vm7, %v619_v16, %v627_v20 }
 0x209   : > { %635 = vst.msk [vmem:[%s423_s16] sm:$0xff] %vm634_vm9, %v632_v21 }
 0x20a   : > { %v644_v22 = vpop.xlane.xlu1 %643 }
 0x20b   : > { %v640_v23 = vpop.xlane.xlu0 %639 }
 0x20c   : > { %v645_v24 = vsel %vm631_vm7, %v640_v23, %v644_v22 }
 0x20d   : > { %646 = vst.msk [vmem:[%s423_s16 + $0xc] sm:$0xf] %vm636_vm8, %v645_v24 }
 0x20e PF: > { %s16_s22 = sadd.s32 1, %s966_s22   ;;  %s1114_s18 = smov %s954_s19 }
 0x20f   : > { %p13_p10 = scmp.ge.s32.totalorder %s16_s22, 4   ;;  %s1115_s19 = smov %s1042_s27 }
 0x210   : > { %s1116_s20 = smov %s962_s21  ;;  %s1117_s21 = smov %s1119_s23 }
 0x211   :  { %15 = sbr.rel (!%p13_p10) target bundleno = 3 (0x3), region = 176 }

</bundles_post_ra>
